<compile_context>
chip_gen: v7x
topology: tpu7x:2x2x1
jax: 0.10.0
libtpu: 0.0.40
codegen_flags: <defaults>
</compile_context>

<pallas_src>
import jax
import jax.numpy as jnp
from jax.experimental import pallas as pl
from jax.experimental.pallas import tpu as pltpu


def _elu(x):
    # F.elu with alpha=1.0:  x if x > 0 else exp(x) - 1
    return jnp.where(x > 0, x, jnp.exp(x) - 1.0)


def actor_critic_kernel(state_ref, mask_ref, drop1_ref, drop2_ref,
                        w1_ref, b1_ref,
                        w2_ref, b2_ref,
                        wa_ref, ba_ref,
                        wc_ref, bc_ref,
                        probs_ref, value_ref):
    # ----- l1 (bf16 MXU, f32 accum) + ELU + dropout(p=0.5) -----
    x = jnp.dot(state_ref[...], w1_ref[...],
                preferred_element_type=jnp.float32) + b1_ref[...]
    x = _elu(x) * drop1_ref[...]            # drop1 already holds {0.0, 2.0}

    # ----- l2 + ELU + dropout(p=0.5) -----
    h = jnp.dot(x.astype(jnp.bfloat16), w2_ref[...],
                preferred_element_type=jnp.float32) + b2_ref[...]
    h = _elu(h) * drop2_ref[...]            # drop2 already holds {0.0, 2.0}

    # ----- actor head: logits, mask invalid actions, softmax -----
    logits = jnp.dot(h.astype(jnp.bfloat16), wa_ref[...],
                     preferred_element_type=jnp.float32) + ba_ref[...]
    # Finite sentinel: exp(-1e30 - m) underflows to exactly 0 for masked actions,
    # and fully-masked rows stay finite (uniform) instead of NaN.
    logits = jnp.where(mask_ref[...] != 0, logits, -1e30)
    m = jnp.max(logits, axis=-1, keepdims=True)
    e = jnp.exp(logits - m)
    probs_ref[...] = e / jnp.sum(e, axis=-1, keepdims=True)

    # ----- critic head: fold the (h2, 1) matmul into a VPU mul + lane reduce ----
    value_ref[...] = jnp.sum(h * wc_ref[...], axis=-1, keepdims=True) + bc_ref[...]


def actor_critic_forward(state, act_mask, params, dropout_key, p_drop=0.5):
    """Forward pass.  params holds bf16-castable (in, out) weights; wc as a row."""
    B = state.shape[0]
    h1 = params["w1"].shape[1]
    h2 = params["w2"].shape[1]
    act_dim = params["wa"].shape[1]

    # Dropout keep-masks with the 1/(1-p) scale pre-folded (values {0, 2}).
    k1, k2 = jax.random.split(dropout_key)
    scale = 1.0 / (1.0 - p_drop)
    drop1 = jnp.where(jax.random.bernoulli(k1, 1.0 - p_drop, (B, h1)),
                      scale, 0.0).astype(jnp.float32)
    drop2 = jnp.where(jax.random.bernoulli(k2, 1.0 - p_drop, (B, h2)),
                      scale, 0.0).astype(jnp.float32)

    vmem = pl.BlockSpec(memory_space=pltpu.MemorySpace.VMEM)
    out_shapes = (
        jax.ShapeDtypeStruct((B, act_dim), jnp.float32),   # act_probs
        jax.ShapeDtypeStruct((B, 1), jnp.float32),         # state_values
    )

    fn = pl.pallas_call(
        actor_critic_kernel,
        out_shape=out_shapes,
        in_specs=[vmem] * 12,
        out_specs=(vmem, vmem),
        # VMEM footprint ~0.6 MiB total -> far under the 32 MiB default scoped
        # limit on every generation (v7x has 64 MiB physical per TC).
    )
    return fn(
        state.astype(jnp.bfloat16),
        act_mask.astype(jnp.int32),
        drop1, drop2,
        params["w1"].astype(jnp.bfloat16), params["b1"],
        params["w2"].astype(jnp.bfloat16), params["b2"],
        params["wa"].astype(jnp.bfloat16), params["ba"],
        params["wc_row"], params["bc"],
    )


def init_params(key, state_dim, act_dim, hidden_sizes):
    """Mimics nn.Linear default init: U(-1/sqrt(fan_in), 1/sqrt(fan_in))."""
    h1, h2 = hidden_sizes
    ks = jax.random.split(key, 8)

    def lin(kw, kb, fan_in, fan_out):
        bound = 1.0 / jnp.sqrt(jnp.float32(fan_in))
        w = jax.random.uniform(kw, (fan_in, fan_out), jnp.float32, -bound, bound)
        b = jax.random.uniform(kb, (1, fan_out), jnp.float32, -bound, bound)
        return w, b

    w1, b1 = lin(ks[0], ks[1], state_dim, h1)
    w2, b2 = lin(ks[2], ks[3], h1, h2)
    wa, ba = lin(ks[4], ks[5], h2, act_dim)
    wc, bc = lin(ks[6], ks[7], h2, 1)
    return dict(w1=w1, b1=b1, w2=w2, b2=b2, wa=wa, ba=ba,
                wc_row=wc.T,   # (1, h2) row for the VPU critic reduce
                bc=bc)         # (1, 1)


if __name__ == "__main__":
    # Small shapes consistent with ActorCritic(state_dim, act_dim, hidden_sizes=[512, 256]).
    B = 8
    STATE_DIM = 128
    ACT_DIM = 128
    HIDDEN = (512, 256)

    key = jax.random.PRNGKey(0)
    k_state, k_mask, k_params, k_drop = jax.random.split(key, 4)

    state = jax.random.normal(k_state, (B, STATE_DIM), dtype=jnp.float32)
    # Random boolean action mask (as int32); column 0 always valid so every row
    # has at least one legal action.
    act_mask = (jax.random.uniform(k_mask, (B, ACT_DIM)) > 0.5).astype(jnp.int32)
    act_mask = act_mask.at[:, 0].set(1)

    params = init_params(k_params, STATE_DIM, ACT_DIM, HIDDEN)

    probs, values = actor_critic_forward(state, act_mask, params, k_drop)
    probs, values = jax.block_until_ready((probs, values))

    # Sanity: shapes, probabilities sum to 1, invalid actions get prob 0.
    assert probs.shape == (B, ACT_DIM) and probs.dtype == jnp.float32
    assert values.shape == (B, 1) and values.dtype == jnp.float32
    row_sums = jnp.sum(probs, axis=-1)
    assert bool(jnp.all(jnp.abs(row_sums - 1.0) < 1e-3))
    assert bool(jnp.all(jnp.where(act_mask == 0, probs, 0.0) == 0.0))
    assert bool(jnp.all(jnp.isfinite(values)))

    print("KERNEL_OK")
</pallas_src>

<mosaic_0001>
module attributes {stable_mosaic.version = 11 : i64} {
  func.func @actor_critic_kernel(%arg0: memref<8x128xbf16, #tpu.memory_space<vmem>>, %arg1: memref<8x128xi32, #tpu.memory_space<vmem>>, %arg2: memref<8x512xf32, #tpu.memory_space<vmem>>, %arg3: memref<8x256xf32, #tpu.memory_space<vmem>>, %arg4: memref<128x512xbf16, #tpu.memory_space<vmem>>, %arg5: memref<1x512xf32, #tpu.memory_space<vmem>>, %arg6: memref<512x256xbf16, #tpu.memory_space<vmem>>, %arg7: memref<1x256xf32, #tpu.memory_space<vmem>>, %arg8: memref<256x128xbf16, #tpu.memory_space<vmem>>, %arg9: memref<1x128xf32, #tpu.memory_space<vmem>>, %arg10: memref<1x256xf32, #tpu.memory_space<vmem>>, %arg11: memref<1x1xf32, #tpu.memory_space<vmem>>, %arg12: memref<8x128xf32, #tpu.memory_space<vmem>>, %arg13: memref<8x1xf32, #tpu.memory_space<vmem>>) attributes {dimension_semantics = [], scalar_prefetch = 0 : i64, scratch_operands = 0 : i64, tpu.core_type = #tpu.core_type<tc>} {
    %c0 = arith.constant 0 : index
    %c0_0 = arith.constant 0 : index
    %0 = vector.load %arg0[%c0, %c0_0] : memref<8x128xbf16, #tpu.memory_space<vmem>>, vector<8x128xbf16>
    %c0_1 = arith.constant 0 : index
    %c0_2 = arith.constant 0 : index
    %1 = vector.load %arg4[%c0_1, %c0_2] : memref<128x512xbf16, #tpu.memory_space<vmem>>, vector<128x512xbf16>
    %cst = arith.constant dense<0.000000e+00> : vector<8x512xf32>
    %2 = tpu.matmul %0, %1, %cst {dimension_numbers = #tpu.dot_dimension_numbers<[1], [0], [0], [1], [0, 0, 1, 1], [], []>} : vector<8x128xbf16>, vector<128x512xbf16>, vector<8x512xf32> -> vector<8x512xf32>
    %c0_3 = arith.constant 0 : index
    %c0_4 = arith.constant 0 : index
    %3 = vector.load %arg5[%c0_3, %c0_4] : memref<1x512xf32, #tpu.memory_space<vmem>>, vector<1x512xf32>
    %4 = vector.broadcast %3 : vector<1x512xf32> to vector<8x512xf32>
    %5 = arith.addf %2, %4 : vector<8x512xf32>
    %cst_5 = arith.constant 0.000000e+00 : f32
    %6 = vector.broadcast %cst_5 : f32 to vector<8x512xf32>
    %7 = arith.cmpf ogt, %5, %6 : vector<8x512xf32>
    %8 = math.exp %5 : vector<8x512xf32>
    %cst_6 = arith.constant 1.000000e+00 : f32
    %9 = vector.broadcast %cst_6 : f32 to vector<8x512xf32>
    %10 = arith.subf %8, %9 : vector<8x512xf32>
    %11 = arith.select %7, %5, %10 : vector<8x512xi1>, vector<8x512xf32>
    %c0_7 = arith.constant 0 : index
    %c0_8 = arith.constant 0 : index
    %12 = vector.load %arg2[%c0_7, %c0_8] : memref<8x512xf32, #tpu.memory_space<vmem>>, vector<8x512xf32>
    %13 = arith.mulf %11, %12 : vector<8x512xf32>
    %14 = arith.truncf %13 : vector<8x512xf32> to vector<8x512xbf16>
    %c0_9 = arith.constant 0 : index
    %c0_10 = arith.constant 0 : index
    %15 = vector.load %arg6[%c0_9, %c0_10] : memref<512x256xbf16, #tpu.memory_space<vmem>>, vector<512x256xbf16>
    %cst_11 = arith.constant dense<0.000000e+00> : vector<8x256xf32>
    %16 = tpu.matmul %14, %15, %cst_11 {dimension_numbers = #tpu.dot_dimension_numbers<[1], [0], [0], [1], [0, 0, 1, 1], [], []>} : vector<8x512xbf16>, vector<512x256xbf16>, vector<8x256xf32> -> vector<8x256xf32>
    %c0_12 = arith.constant 0 : index
    %c0_13 = arith.constant 0 : index
    %17 = vector.load %arg7[%c0_12, %c0_13] : memref<1x256xf32, #tpu.memory_space<vmem>>, vector<1x256xf32>
    %18 = vector.broadcast %17 : vector<1x256xf32> to vector<8x256xf32>
    %19 = arith.addf %16, %18 : vector<8x256xf32>
    %cst_14 = arith.constant 0.000000e+00 : f32
    %20 = vector.broadcast %cst_14 : f32 to vector<8x256xf32>
    %21 = arith.cmpf ogt, %19, %20 : vector<8x256xf32>
    %22 = math.exp %19 : vector<8x256xf32>
    %cst_15 = arith.constant 1.000000e+00 : f32
    %23 = vector.broadcast %cst_15 : f32 to vector<8x256xf32>
    %24 = arith.subf %22, %23 : vector<8x256xf32>
    %25 = arith.select %21, %19, %24 : vector<8x256xi1>, vector<8x256xf32>
    %c0_16 = arith.constant 0 : index
    %c0_17 = arith.constant 0 : index
    %26 = vector.load %arg3[%c0_16, %c0_17] : memref<8x256xf32, #tpu.memory_space<vmem>>, vector<8x256xf32>
    %27 = arith.mulf %25, %26 : vector<8x256xf32>
    %28 = arith.truncf %27 : vector<8x256xf32> to vector<8x256xbf16>
    %c0_18 = arith.constant 0 : index
    %c0_19 = arith.constant 0 : index
    %29 = vector.load %arg8[%c0_18, %c0_19] : memref<256x128xbf16, #tpu.memory_space<vmem>>, vector<256x128xbf16>
    %cst_20 = arith.constant dense<0.000000e+00> : vector<8x128xf32>
    %30 = tpu.matmul %28, %29, %cst_20 {dimension_numbers = #tpu.dot_dimension_numbers<[1], [0], [0], [1], [0, 0, 1, 1], [], []>} : vector<8x256xbf16>, vector<256x128xbf16>, vector<8x128xf32> -> vector<8x128xf32>
    %c0_21 = arith.constant 0 : index
    %c0_22 = arith.constant 0 : index
    %31 = vector.load %arg9[%c0_21, %c0_22] : memref<1x128xf32, #tpu.memory_space<vmem>>, vector<1x128xf32>
    %32 = vector.broadcast %31 : vector<1x128xf32> to vector<8x128xf32>
    %33 = arith.addf %30, %32 : vector<8x128xf32>
    %c0_23 = arith.constant 0 : index
    %c0_24 = arith.constant 0 : index
    %34 = vector.load %arg1[%c0_23, %c0_24] : memref<8x128xi32, #tpu.memory_space<vmem>>, vector<8x128xi32>
    %c0_i32 = arith.constant 0 : i32
    %35 = vector.broadcast %c0_i32 : i32 to vector<8x128xi32>
    %36 = arith.cmpi ne, %34, %35 : vector<8x128xi32>
    %cst_25 = arith.constant -1.000000e+30 : f32
    %37 = vector.broadcast %cst_25 : f32 to vector<8x128xf32>
    %38 = arith.select %36, %33, %37 : vector<8x128xi1>, vector<8x128xf32>
    %cst_26 = arith.constant dense<0xFF800000> : vector<8xf32>
    %39 = vector.multi_reduction <maximumf>, %38, %cst_26 [1] : vector<8x128xf32> to vector<8xf32>
    %40 = vector.shape_cast %39 : vector<8xf32> to vector<8x1xf32>
    %41 = vector.broadcast %40 : vector<8x1xf32> to vector<8x128xf32>
    %42 = arith.subf %38, %41 : vector<8x128xf32>
    %43 = math.exp %42 : vector<8x128xf32>
    %cst_27 = arith.constant dense<0.000000e+00> : vector<8xf32>
    %44 = vector.multi_reduction <add>, %43, %cst_27 [1] : vector<8x128xf32> to vector<8xf32>
    %45 = vector.shape_cast %44 : vector<8xf32> to vector<8x1xf32>
    %46 = vector.broadcast %45 : vector<8x1xf32> to vector<8x128xf32>
    %47 = arith.divf %43, %46 : vector<8x128xf32>
    %c0_28 = arith.constant 0 : index
    %c0_29 = arith.constant 0 : index
    %48 = vector.load %arg12[%c0_28, %c0_29] : memref<8x128xf32, #tpu.memory_space<vmem>>, vector<8x128xf32>
    tpu.vector_store %arg12[%c0_28, %c0_29], %47 {strides = array<i32>} : memref<8x128xf32, #tpu.memory_space<vmem>>, vector<8x128xf32>,
    %c0_30 = arith.constant 0 : index
    %c0_31 = arith.constant 0 : index
    %49 = vector.load %arg10[%c0_30, %c0_31] : memref<1x256xf32, #tpu.memory_space<vmem>>, vector<1x256xf32>
    %50 = vector.broadcast %49 : vector<1x256xf32> to vector<8x256xf32>
    %51 = arith.mulf %27, %50 : vector<8x256xf32>
    %cst_32 = arith.constant dense<0.000000e+00> : vector<8xf32>
    %52 = vector.multi_reduction <add>, %51, %cst_32 [1] : vector<8x256xf32> to vector<8xf32>
    %53 = vector.shape_cast %52 : vector<8xf32> to vector<8x1xf32>
    %c0_33 = arith.constant 0 : index
    %c0_34 = arith.constant 0 : index
    %54 = vector.load %arg11[%c0_33, %c0_34] : memref<1x1xf32, #tpu.memory_space<vmem>>, vector<1x1xf32>
    %55 = vector.broadcast %54 : vector<1x1xf32> to vector<8x1xf32>
    %56 = arith.addf %53, %55 : vector<8x1xf32>
    %c0_35 = arith.constant 0 : index
    %c0_36 = arith.constant 0 : index
    %57 = vector.load %arg13[%c0_35, %c0_36] : memref<8x1xf32, #tpu.memory_space<vmem>>, vector<8x1xf32>
    tpu.vector_store %arg13[%c0_35, %c0_36], %56 {strides = array<i32>} : memref<8x1xf32, #tpu.memory_space<vmem>>, vector<8x1xf32>,
    return
  }
}

</mosaic_0001>

<bundles_post_ra>
// kernel: tpu_custom_call.1
= control target key start
LH: loop header
LB: loop body
LE: loop exit
PB: predicated region body
PF: predicated region fallthrough
CT: control target
= control target key end

     0   :  { %s1944_s0 = inlined_call_operand.hbm [shape: bf16[8,128], index: 0, kind: input, shape index: {}]   ;;  %s1945_s1 = inlined_call_operand.hbm [shape: s32[8,128], index: 1, kind: input, shape index: {}]   ;;  %s1946_s2 = inlined_call_operand.hbm [shape: f32[8,512], index: 2, kind: input, shape index: {}]   ;;  %s1947_s3 = inlined_call_operand.hbm [shape: f32[8,256], index: 3, kind: input, shape index: {}]   ;;  %s1948_s4 = inlined_call_operand.hbm [shape: bf16[128,512], index: 4, kind: input, shape index: {}]   ;;  %s1949_s5 = inlined_call_operand.vmem [shape: f32[1,512], index: 5, kind: input, shape index: {}]   ;;  %s1950_s6 = inlined_call_operand.hbm [shape: bf16[512,256], index: 6, kind: input, shape index: {}]   ;;  %s1951_s7 = inlined_call_operand.vmem [shape: f32[1,256], index: 7, kind: input, shape index: {}]   ;;  %s1952_s8 = inlined_call_operand.hbm [shape: bf16[256,128], index: 8, kind: input, shape index: {}]   ;;  %s1953_s9 = inlined_call_operand.vmem [shape: f32[1,128], index: 9, kind: input, shape index: {}]   ;;  %s1954_s10 = inlined_call_operand.vmem [shape: f32[1,256], index: 10, kind: input, shape index: {}]   ;;  %s1955_s11 = inlined_call_operand.<no memory space> [shape: f32[1,1], index: 11, kind: input, shape index: {}]   ;;  %s1956_s12 = inlined_call_operand.hbm [shape: f32[8,128], index: 12, kind: output, shape index: {0}]   ;;  %s1957_s13 = inlined_call_operand.vmem [shape: f32[8,1], index: 13, kind: output, shape index: {1}]  }
   0x1   :  { %v19_v0 = vstv %s1955_s11 }
   0x2   :  { %20 = vst [vmem:[#allocation2] sm:$0x1] %v19_v0 }
   0x3   :  { %21 = vsyncpa [#allocation4], 0 }
   0x4   :  { %22 = vsyncpa [#allocation7], 0 }
   0x5   :  { %23 = vsyncpa [#allocation10], 0 }
   0x6   :  { %24 = vsyncpa [#allocation13], 0 }
   0x7   :  { %25 = vsyncpa [#allocation5], 0  ;;  %s1719_s27 = smov [#allocation6]   ;;  %s1720_s29 = smov [#allocation9]  }
   0x8   :  { %s42_s28 = sshll.u32 %s1719_s27, 4  ;;  %s62_s30 = sshll.u32 %s1720_s29, 4  ;;  %s43_s28 = int_to_ptr.vmem [resolvable:$true] %s42_s28  ;;  %s63_s30 = int_to_ptr.vmem [resolvable:$true] %s62_s30 }
   0x9   :  { %s1533_s16 = scalar_lea.hbm %s1945_s1, 128 }
   0xa   :  { %p1534_p0 = scmp.ne.s32.totalorder %s1945_s1, %s1533_s16  ;;  %p1537_p1 = scmp.lt.u32.totalorder %s1533_s16, %s1945_s1 }
   0xc   :  { %p1539_p2 = pnand %p1537_p1, %p1534_p0 }
   0xe   :  { %1542 = shalt.err (!%p1539_p2)
}
   0xf   :  { %s1543_s20 = scalar_lea.vmem %s43_s28, 128  ;;  %p1548_p4 = scmp.lt.s32.totalorder %s43_s28, %s43_s28 }
  0x10   :  { %p1544_p3 = scmp.ne.s32.totalorder %s43_s28, %s1543_s20  ;;  %p1549_p5 = scmp.lt.s32.totalorder %s1543_s20, %s1543_s20 }
  0x12   :  { %p1550_p6 = por %p1549_p5, %p1548_p4 }
  0x14   :  { %p1551_p7 = pnand %p1550_p6, %p1544_p3 }
  0x16   :  { %1554 = shalt.err (!%p1551_p7)
}
  0x17   :  { %45 = dma.hbm_to_vmem [thread:$0]  %s1945_s1, 128, %s43_s28, [#allocation7]  }
  0x18   :  { %s1555_s25 = scalar_lea.hbm %s1947_s3, 256 }
  0x19   :  { %p1556_p8 = scmp.ne.s32.totalorder %s1947_s3, %s1555_s25  ;;  %p1559_p9 = scmp.lt.u32.totalorder %s1555_s25, %s1947_s3 }
  0x1b   :  { %p1561_p10 = pnand %p1559_p9, %p1556_p8 }
  0x1d   :  { %1564 = shalt.err (!%p1561_p10)
}
  0x1e   :  { %s1565_s15 = scalar_lea.vmem %s63_s30, 256  ;;  %p1570_p12 = scmp.lt.s32.totalorder %s63_s30, %s63_s30 }
  0x1f   :  { %p1566_p11 = scmp.ne.s32.totalorder %s63_s30, %s1565_s15  ;;  %p1571_p13 = scmp.lt.s32.totalorder %s1565_s15, %s1565_s15 }
  0x21   :  { %p1572_p0 = por %p1571_p13, %p1570_p12 }
  0x23   :  { %p1573_p1 = pnand %p1572_p0, %p1566_p11 }
  0x25   :  { %1576 = shalt.err (!%p1573_p1)
}
  0x26   :  { %65 = dma.hbm_to_vmem [thread:$0]  %s1947_s3, 256, %s63_s30, [#allocation10]  }
  0x27   :  { %s1721_s16 = smov [#allocation12]   ;;  %s1577_s19 = scalar_lea.hbm %s1950_s6, 8192 }
  0x28   :  { %s85_s17 = sshll.u32 %s1721_s16, 4  ;;  %p1578_p2 = scmp.ne.s32.totalorder %s1950_s6, %s1577_s19  ;;  %s86_s17 = int_to_ptr.vmem [resolvable:$true] %s85_s17 }
  0x29   :  { %p1581_p3 = scmp.lt.u32.totalorder %s1577_s19, %s1950_s6 }
  0x2b   :  { %p1583_p4 = pnand %p1581_p3, %p1578_p2 }
  0x2d   :  { %1586 = shalt.err (!%p1583_p4)
}
  0x2e   :  { %s1587_s24 = scalar_lea.vmem %s86_s17, 8192  ;;  %p1592_p6 = scmp.lt.s32.totalorder %s86_s17, %s86_s17 }
  0x2f   :  { %p1588_p5 = scmp.ne.s32.totalorder %s86_s17, %s1587_s24  ;;  %p1593_p7 = scmp.lt.s32.totalorder %s1587_s24, %s1587_s24 }
  0x31   :  { %p1594_p8 = por %p1593_p7, %p1592_p6 }
  0x33   :  { %p1595_p9 = pnand %p1594_p8, %p1588_p5 }
  0x35   :  { %1598 = shalt.err (!%p1595_p9)
}
  0x36   :  { %s1722_s3 = smov 128   ;;  %s1723_s30 = smov 8  }
  0x37   :  { %91 = dma.hbm_to_vmem [thread:$0]  %s1950_s6, 8192, %s86_s17, [#allocation13], %s1722_s3, %s1722_s3, %s1723_s30  }
  0x38   :  { %s1724_s27 = smov [#allocation3]   ;;  %s1725_s14 = smov [#allocation8]  }
  0x39   :  { %s32_s29 = sshll.u32 %s1724_s27, 4  ;;  %s52_s15 = sshll.u32 %s1725_s14, 4  ;;  %s33_s29 = int_to_ptr.vmem [resolvable:$true] %s32_s29  ;;  %s53_s15 = int_to_ptr.vmem [resolvable:$true] %s52_s15 }
  0x3a   :  { %s1599_s16 = scalar_lea.hbm %s1944_s0, 64 }
  0x3b   :  { %p1600_p10 = scmp.ne.s32.totalorder %s1944_s0, %s1599_s16  ;;  %p1603_p11 = scmp.lt.u32.totalorder %s1599_s16, %s1944_s0 }
  0x3d   :  { %p1605_p12 = pnand %p1603_p11, %p1600_p10 }
  0x3f   :  { %1608 = shalt.err (!%p1605_p12)
}
  0x40   :  { %s1609_s6 = scalar_lea.vmem %s33_s29, 64  ;;  %p1614_p0 = scmp.lt.s32.totalorder %s33_s29, %s33_s29 }
  0x41   :  { %p1610_p13 = scmp.ne.s32.totalorder %s33_s29, %s1609_s6  ;;  %p1615_p1 = scmp.lt.s32.totalorder %s1609_s6, %s1609_s6 }
  0x43   :  { %p1616_p2 = por %p1615_p1, %p1614_p0 }
  0x45   :  { %p1617_p3 = pnand %p1616_p2, %p1610_p13 }
  0x47   :  { %1620 = shalt.err (!%p1617_p3)
}
  0x48   :  { %35 = dma.hbm_to_vmem [thread:$0]  %s1944_s0, 64, %s33_s29, [#allocation4]  }
  0x49   :  { %s1621_s24 = scalar_lea.hbm %s1946_s2, 512 }
  0x4a   :  { %p1622_p4 = scmp.ne.s32.totalorder %s1946_s2, %s1621_s24  ;;  %p1625_p5 = scmp.lt.u32.totalorder %s1621_s24, %s1946_s2 }
  0x4c   :  { %p1627_p6 = pnand %p1625_p5, %p1622_p4 }
  0x4e   :  { %1630 = shalt.err (!%p1627_p6)
}
  0x4f   :  { %s1631_s27 = scalar_lea.vmem %s53_s15, 512  ;;  %p1636_p8 = scmp.lt.s32.totalorder %s53_s15, %s53_s15 }
  0x50   :  { %p1632_p7 = scmp.ne.s32.totalorder %s53_s15, %s1631_s27  ;;  %p1637_p9 = scmp.lt.s32.totalorder %s1631_s27, %s1631_s27 }
  0x52   :  { %p1638_p10 = por %p1637_p9, %p1636_p8 }
  0x54   :  { %p1639_p11 = pnand %p1638_p10, %p1632_p7 }
  0x56   :  { %1642 = shalt.err (!%p1639_p11)
}
  0x57   :  { %55 = dma.hbm_to_vmem [thread:$0]  %s1946_s2, 512, %s53_s15, [#allocation7]  }
  0x58   :  { %s1726_s14 = smov [#allocation11]   ;;  %s1643_s18 = scalar_lea.hbm %s1948_s4, 4096 }
  0x59   :  { %s71_s1 = sshll.u32 %s1726_s14, 4  ;;  %p1644_p12 = scmp.ne.s32.totalorder %s1948_s4, %s1643_s18  ;;  %s72_s1 = int_to_ptr.vmem [resolvable:$true] %s71_s1 }
  0x5a   :  { %p1647_p13 = scmp.lt.u32.totalorder %s1643_s18, %s1948_s4 }
  0x5c   :  { %p1649_p0 = pnand %p1647_p13, %p1644_p12 }
  0x5e   :  { %1652 = shalt.err (!%p1649_p0)
}
  0x5f   :  { %s1653_s17 = scalar_lea.vmem %s72_s1, 4096  ;;  %p1658_p2 = scmp.lt.s32.totalorder %s72_s1, %s72_s1 }
  0x60   :  { %p1654_p1 = scmp.ne.s32.totalorder %s72_s1, %s1653_s17  ;;  %p1659_p3 = scmp.lt.s32.totalorder %s1653_s17, %s1653_s17 }
  0x62   :  { %p1660_p4 = por %p1659_p3, %p1658_p2 }
  0x64   :  { %p1661_p5 = pnand %p1660_p4, %p1654_p1 }
  0x66   :  { %1664 = shalt.err (!%p1661_p5)
}
  0x67   :  { %s1727_s2 = smov 256   ;;  %s1728_s15 = smov 16  }
  0x68   :  { %77 = dma.hbm_to_vmem [thread:$0]  %s1948_s4, 4096, %s72_s1, [#allocation10], %s1727_s2, %s1727_s2, %s1728_s15  }
  0x69   :  { %s1729_s23 = smov [#allocation14]   ;;  %s1665_s25 = scalar_lea.hbm %s1952_s8, 2048 }
  0x6a   :  { %s99_s24 = sshll.u32 %s1729_s23, 4  ;;  %p1666_p6 = scmp.ne.s32.totalorder %s1952_s8, %s1665_s25  ;;  %s100_s24 = int_to_ptr.vmem [resolvable:$true] %s99_s24 }
  0x6b   :  { %p1669_p7 = scmp.lt.u32.totalorder %s1665_s25, %s1952_s8 }
  0x6d   :  { %p1671_p8 = pnand %p1669_p7, %p1666_p6 }
  0x6f   :  { %1674 = shalt.err (!%p1671_p8)
}
  0x70   :  { %s1675_s14 = scalar_lea.vmem %s100_s24, 2048  ;;  %p1680_p10 = scmp.lt.s32.totalorder %s100_s24, %s100_s24 }
  0x71   :  { %p1676_p9 = scmp.ne.s32.totalorder %s100_s24, %s1675_s14  ;;  %p1681_p11 = scmp.lt.s32.totalorder %s1675_s14, %s1675_s14 }
  0x73   :  { %p1682_p12 = por %p1681_p11, %p1680_p10 }
  0x75   :  { %p1683_p13 = pnand %p1682_p12, %p1676_p9 }
  0x77   :  { %1686 = shalt.err (!%p1683_p13)
}
  0x78   :  { %s1730_s4 = smov 64   ;;  %s1731_s1 = smov 4  }
  0x79   :  { %105 = dma.hbm_to_vmem [thread:$0]  %s1952_s8, 2048, %s100_s24, [#allocation13], %s1730_s4, %s1730_s4, %s1731_s1  }
  0x7a   :  { %1709 = dma.done.wait [#allocation4], 64  }
  0x7b   :  { %1710 = vsyncadd [#allocation4], 4294967232 }
  0x7c   :  { %1711 = dma.done.wait [#allocation7], 640  }
  0x7d   :  { %1712 = vsyncadd [#allocation7], 4294966656 }
  0x7e   :  { %1713 = dma.done.wait [#allocation10], 4352  }
  0x7f   :  { %1714 = vsyncadd [#allocation10], 4294962944 }
  0x80   :  { %1715 = dma.done.wait [#allocation13], 10240  }
  0x81   :  { %1716 = vsyncadd [#allocation13], 4294957056  ;;  %v1732_v1 = vmov 0   ;;  %v1357_v2 = vld [vmem:[#allocation11 + $0x4] ss:$16 sps:$4 sm:$0xff]   ;;  %vm1170_vm6 = vcmask 7168  }
  0x82   :  { %381 = vmatprep.mubr.bf16.mxu1 %v1732_v1  ;;  %v1359_v3 = vld [vmem:[#allocation11] ss:$16 sps:$4 sm:$0xff]   ;;  %349 = vmatprep.subr.bf16.mxu1 %v1357_v2  ;;  %v1360_v4 = vld [vmem:[#allocation11 + $0x24] ss:$16 sps:$4 sm:$0xff]   ;;  %v1383_v23 = vld [vmem:[#allocation11 + $0xc] ss:$16 sps:$4 sm:$0xff]  }
  0x83   :  { %350 = vmatpush1.bf16.msra.mxu1 %v1359_v3  ;;  %v1362_v5 = vld [vmem:[#allocation11 + $0x20] ss:$16 sps:$4 sm:$0xff]   ;;  %v1363_v6 = vld [vmem:[#allocation11 + $0x44] ss:$16 sps:$4 sm:$0xff]   ;;  %v1381_v27 = vld [vmem:[#allocation11 + $0x8] ss:$16 sps:$4 sm:$0xff]  }
  0x84   :  { %351 = vmatprep.subr.bf16.mxu1 %v1360_v4  ;;  %v1365_v7 = vld [vmem:[#allocation11 + $0x40] ss:$16 sps:$4 sm:$0xff]   ;;  %v1366_v8 = vld [vmem:[#allocation11 + $0x64] ss:$16 sps:$4 sm:$0xff]   ;;  %v1386_v28 = vld [vmem:[#allocation11 + $0x2c] ss:$16 sps:$4 sm:$0xff]  }
  0x85   :  { %v1368_v9 = vld [vmem:[#allocation11 + $0x60] ss:$16 sps:$4 sm:$0xff]   ;;  %v1369_v10 = vld [vmem:[#allocation11 + $0x84] ss:$16 sps:$4 sm:$0xff]   ;;  %v1384_v29 = vld [vmem:[#allocation11 + $0x28] ss:$16 sps:$4 sm:$0xff]  }
  0x86   :  { %v1371_v11 = vld [vmem:[#allocation11 + $0x80] ss:$16 sps:$4 sm:$0xff]   ;;  %v1372_v12 = vld [vmem:[#allocation11 + $0xa4] ss:$16 sps:$4 sm:$0xff]   ;;  %v1389_v31 = vld [vmem:[#allocation11 + $0x4c] ss:$16 sps:$4 sm:$0xff]  }
  0x87   :  { %352 = vmatpush1.bf16.msra.mxu1 %v1362_v5  ;;  %v1374_v13 = vld [vmem:[#allocation11 + $0xa0] ss:$16 sps:$4 sm:$0xff]   ;;  %v1375_v14 = vld [vmem:[#allocation11 + $0xc4] ss:$16 sps:$4 sm:$0xff]   ;;  %v1387_v35 = vld [vmem:[#allocation11 + $0x48] ss:$16 sps:$4 sm:$0xff]  }
  0x88   :  { %353 = vmatprep.subr.bf16.mxu1 %v1363_v6  ;;  %v1377_v15 = vld [vmem:[#allocation11 + $0xc0] ss:$16 sps:$4 sm:$0xff]   ;;  %v1405_v16 = vld [vmem:[#allocation12 + $0x4] ss:$8 sps:$4 sm:$0xff]   ;;  %v1408_v18 = vld [vmem:[#allocation12 + $0x14] ss:$8 sps:$4 sm:$0xff]  }
  0x89   :  { %v1407_v17 = vld [vmem:[#allocation12] ss:$8 sps:$4 sm:$0xff]   ;;  %v1378_v19 = vld [vmem:[#allocation11 + $0xe4] ss:$16 sps:$4 sm:$0xff]   ;;  %859 = vmatprep.subr.bf16.mxu0 %v1405_v16  ;;  %v1410_v20 = vld [vmem:[#allocation12 + $0x10] ss:$8 sps:$4 sm:$0xff]  }
  0x8a   :  { %860 = vmatpush1.bf16.msra.mxu0 %v1407_v17  ;;  %v1411_v21 = vld [vmem:[#allocation12 + $0x24] ss:$8 sps:$4 sm:$0xff]   ;;  %v1380_v22 = vld [vmem:[#allocation11 + $0xe0] ss:$16 sps:$4 sm:$0xff]   ;;  %v1414_v26 = vld [vmem:[#allocation12 + $0x34] ss:$8 sps:$4 sm:$0xff]  }
  0x8b   :  { %354 = vmatpush1.bf16.msra.mxu1 %v1365_v7  ;;  %861 = vmatprep.subr.bf16.mxu0 %v1408_v18  ;;  %v1413_v24 = vld [vmem:[#allocation12 + $0x20] ss:$8 sps:$4 sm:$0xff]   ;;  %v1891_v25 = vld [vmem:[#allocation3] sm:$0xf]  ;;  %v1416_v30 = vld [vmem:[#allocation12 + $0x30] ss:$8 sps:$4 sm:$0xff]  }
  0x8c   :  { %355 = vmatprep.subr.bf16.mxu1 %v1366_v8  ;;  %v1417_v32 = vld [vmem:[#allocation12 + $0x44] ss:$8 sps:$4 sm:$0xff]   ;;  %v1419_v33 = vld [vmem:[#allocation12 + $0x40] ss:$8 sps:$4 sm:$0xff]   ;;  %v1420_v34 = vld [vmem:[#allocation12 + $0x54] ss:$8 sps:$4 sm:$0xff]   ;;  %v169_v8 = vlaneseq }
  0x8d   :  { %v1392_v36 = vld [vmem:[#allocation11 + $0x6c] ss:$16 sps:$4 sm:$0xff]   ;;  %v1422_v37 = vld [vmem:[#allocation12 + $0x50] ss:$8 sps:$4 sm:$0xff]   ;;  %v1425_v41 = vld [vmem:[#allocation12 + $0x60] ss:$8 sps:$4 sm:$0xff]  }
  0x8e   :  { %862 = vmatpush1.bf16.msra.mxu0 %v1410_v20  ;;  %v1423_v38 = vld [vmem:[#allocation12 + $0x64] ss:$8 sps:$4 sm:$0xff]   ;;  %v1390_v39 = vld [vmem:[#allocation11 + $0x68] ss:$16 sps:$4 sm:$0xff]   ;;  %v1426_v42 = vld [vmem:[#allocation12 + $0x74] ss:$8 sps:$4 sm:$0xff]  }
  0x8f   :  { %356 = vmatpush1.bf16.msra.mxu1 %v1368_v9  ;;  %863 = vmatprep.subr.bf16.mxu0 %v1411_v21  ;;  %v1395_v40 = vld [vmem:[#allocation11 + $0x8c] ss:$16 sps:$4 sm:$0xff]   ;;  %v1393_v43 = vld [vmem:[#allocation11 + $0x88] ss:$16 sps:$4 sm:$0xff]   ;;  %v1501_v4 = vld [vmem:[#allocation14 + $0x40] sm:$0xff]   ;;  %v1895_v9 = vshrl.u32 %v169_v8, 7 }
  0x90   :  { %357 = vmatprep.subr.bf16.mxu1 %v1369_v10  ;;  %v1398_v44 = vld [vmem:[#allocation11 + $0xac] ss:$16 sps:$4 sm:$0xff]   ;;  %v1428_v45 = vld [vmem:[#allocation12 + $0x70] ss:$8 sps:$4 sm:$0xff]   ;;  %v1431_v49 = vld [vmem:[#allocation12 + $0x80] ss:$8 sps:$4 sm:$0xff]  }
  0x91   :  { %v1429_v46 = vld [vmem:[#allocation12 + $0x84] ss:$8 sps:$4 sm:$0xff]   ;;  %v1396_v47 = vld [vmem:[#allocation11 + $0xa8] ss:$16 sps:$4 sm:$0xff]   ;;  %v1432_v50 = vld [vmem:[#allocation12 + $0x94] ss:$8 sps:$4 sm:$0xff]  }
  0x92   :  { %864 = vmatpush1.bf16.msra.mxu0 %v1413_v24  ;;  %v1401_v48 = vld [vmem:[#allocation11 + $0xcc] ss:$16 sps:$4 sm:$0xff]   ;;  %v1399_v51 = vld [vmem:[#allocation11 + $0xc8] ss:$16 sps:$4 sm:$0xff]   ;;  %v1502_v5 = vld [vmem:[#allocation14] sm:$0xff]   ;;  %v1898_v10 = vsub.s32 0, %v1895_v9 }
  0x93   :  { %358 = vmatpush1.bf16.msra.mxu1 %v1371_v11  ;;  %865 = vmatprep.subr.bf16.mxu0 %v1414_v26  ;;  %v1404_v52 = vld [vmem:[#allocation11 + $0xec] ss:$16 sps:$4 sm:$0xff]   ;;  %v1434_v53 = vld [vmem:[#allocation12 + $0x90] ss:$8 sps:$4 sm:$0xff]   ;;  %v1437_v56 = vld [vmem:[#allocation12 + $0xa0] ss:$8 sps:$4 sm:$0xff]  }
  0x94   :  { %359 = vmatprep.subr.bf16.mxu1 %v1372_v12  ;;  %v1402_v54 = vld [vmem:[#allocation11 + $0xe8] ss:$16 sps:$4 sm:$0xff]   ;;  %v1435_v55 = vld [vmem:[#allocation12 + $0xa4] ss:$8 sps:$4 sm:$0xff]   ;;  %v1438_v57 = vld [vmem:[#allocation12 + $0xb4] ss:$8 sps:$4 sm:$0xff]  }
  0x95   :  { %v1440_v58 = vld [vmem:[#allocation12 + $0xb0] ss:$8 sps:$4 sm:$0xff]   ;;  %v1441_v59 = vld [vmem:[#allocation12 + $0xc4] ss:$8 sps:$4 sm:$0xff]   ;;  %v1443_v60 = vld [vmem:[#allocation12 + $0xc0] ss:$8 sps:$4 sm:$0xff]  }
  0x96   :  { %866 = vmatpush1.bf16.msra.mxu0 %v1416_v30  ;;  %v1444_v61 = vld [vmem:[#allocation12 + $0xd4] ss:$8 sps:$4 sm:$0xff]   ;;  %v1446_v62 = vld [vmem:[#allocation12 + $0xd0] ss:$8 sps:$4 sm:$0xff]   ;;  %v1447_v63 = vld [vmem:[#allocation12 + $0xe4] ss:$8 sps:$4 sm:$0xff]  }
  0x97   :  { %360 = vmatpush1.bf16.msra.mxu1 %v1374_v13  ;;  %867 = vmatprep.subr.bf16.mxu0 %v1417_v32  ;;  %v1449_v0 = vld [vmem:[#allocation12 + $0xe0] ss:$8 sps:$4 sm:$0xff]   ;;  %v1452_v2 = vld [vmem:[#allocation12 + $0xf0] ss:$8 sps:$4 sm:$0xff]   ;;  %v1455_v3 = vld [vmem:[#allocation12 + $0x104] ss:$8 sps:$4 sm:$0xff]  }
  0x98   :  { %361 = vmatprep.subr.bf16.mxu1 %v1375_v14  ;;  %v1503_v6 = vld [vmem:[#allocation14 + $0x48] sm:$0xff]   ;;  %v1903_v11 = vld [vmem:[%s1949_s5] sm:$0xf]  ;;  %v1906_v12 = vsub.s32 1, %v1895_v9  ;;  %v451_v26 = vld [vmem:[#allocation8] sm:$0xff] }
  0x99   :  { %v1504_v7 = vld [vmem:[#allocation14 + $0x8] sm:$0xff]   ;;  %v172_v13 = vrot.slane %v1903_v11, %v1898_v10 }
  0x9a   :  { %868 = vmatpush1.bf16.msra.mxu0 %v1419_v33  ;;  %v176_v14 = vrot.slane %v1903_v11, %v1906_v12  ;;  %v1485_v8 = vld [vmem:[#allocation12 + $0x1a4] ss:$8 sps:$4 sm:$0xff]  }
  0x9b   :  { %362 = vmatpush1.bf16.msra.mxu1 %v1377_v15  ;;  %869 = vmatprep.subr.bf16.mxu0 %v1420_v34  ;;  %v1453_v34 = vld [vmem:[#allocation12 + $0x100] ss:$8 sps:$4 sm:$0xff]  }
  0x9c   :  { %363 = vmatprep.subr.bf16.mxu1 %v1378_v19 }
  0x9e   :  { %870 = vmatpush1.bf16.msra.mxu0 %v1422_v37  ;;  %v1456_v37 = vld [vmem:[#allocation12 + $0x110] ss:$8 sps:$4 sm:$0xff]  }
  0x9f   :  { %364 = vmatpush1.bf16.msra.mxu1 %v1380_v22  ;;  %871 = vmatprep.subr.bf16.mxu0 %v1423_v38  ;;  %v183_v38 = vsub.s32 3, %v1895_v9 }
  0xa0   :  { %390 = vmatprep.subr.bf16.mxu1 %v1383_v23 }
  0xa2   :  { %382 = vmatmul.mubr.bf16.vlgmr.msra.gmra.mrb[0].mxu1 %v1891_v25  ;;  %872 = vmatpush1.bf16.msra.mxu0 %v1425_v41  ;;  %v184_v41 = vrot.slane %v1903_v11, %v183_v38  ;;  %v1515_v38 = vld [vmem:[#allocation14 + $0x78] sm:$0xff]  }
  0xa3   :  { %391 = vmatpush1.bf16.msra.mxu1 %v1381_v27  ;;  %422 = vmatprep.mubr.bf16.mxu1 %v1732_v1  ;;  %v1450_v1 = vld [vmem:[#allocation12 + $0xf4] ss:$8 sps:$4 sm:$0xff]  }
  0xa4   :  { %392 = vmatprep.subr.bf16.mxu1 %v1386_v28  ;;  %873 = vmatprep.subr.bf16.mxu0 %v1426_v42  ;;  %v452_v28 = vld [vmem:[#allocation8 + $0x8] sm:$0xff] }
  0xa5   :  { %v1464_v42 = vld [vmem:[#allocation12 + $0x134] ss:$8 sps:$4 sm:$0xff]  }
  0xa6   :  { %874 = vmatpush1.bf16.msra.mxu0 %v1428_v45  ;;  %v1462_v45 = vld [vmem:[#allocation12 + $0x130] ss:$8 sps:$4 sm:$0xff]  }
  0xa7   :  { %393 = vmatpush1.bf16.msra.mxu1 %v1384_v29  ;;  %875 = vmatprep.subr.bf16.mxu0 %v1429_v46 }
  0xa8   :  { %394 = vmatprep.subr.bf16.mxu1 %v1389_v31 }
  0xaa   :  { %876 = vmatpush1.bf16.msra.mxu0 %v1431_v49 }
  0xab   :  { %395 = vmatpush1.bf16.msra.mxu1 %v1387_v35  ;;  %877 = vmatprep.subr.bf16.mxu0 %v1432_v50 }
  0xac   :  { %396 = vmatprep.subr.bf16.mxu1 %v1392_v36  ;;  %v1458_v36 = vld [vmem:[#allocation12 + $0x114] ss:$8 sps:$4 sm:$0xff]  }
  0xae   :  { %878 = vmatpush1.bf16.msra.mxu0 %v1434_v53  ;;  %v1468_v53 = vld [vmem:[#allocation12 + $0x150] ss:$8 sps:$4 sm:$0xff]  }
  0xaf   :  { %397 = vmatpush1.bf16.msra.mxu1 %v1390_v39  ;;  %879 = vmatprep.subr.bf16.mxu0 %v1435_v55  ;;  %v1461_v39 = vld [vmem:[#allocation12 + $0x124] ss:$8 sps:$4 sm:$0xff]   ;;  %v1471_v55 = vld [vmem:[#allocation12 + $0x160] ss:$8 sps:$4 sm:$0xff]  }
  0xb0   :  { %398 = vmatprep.subr.bf16.mxu1 %v1395_v40  ;;  %v1459_v40 = vld [vmem:[#allocation12 + $0x120] ss:$8 sps:$4 sm:$0xff]  }
  0xb2   :  { %880 = vmatpush1.bf16.msra.mxu0 %v1437_v56  ;;  %v179_v56 = vsub.s32 2, %v1895_v9  ;;  %v1483_v9 = vld [vmem:[#allocation12 + $0x1a0] ss:$8 sps:$4 sm:$0xff]  }
  0xb3   :  { %399 = vmatpush1.bf16.msra.mxu1 %v1393_v43  ;;  %881 = vmatprep.subr.bf16.mxu0 %v1438_v57  ;;  %v1476_v57 = vld [vmem:[#allocation12 + $0x174] ss:$8 sps:$4 sm:$0xff]  }
  0xb4   :  { %400 = vmatprep.subr.bf16.mxu1 %v1398_v44 }
  0xb6   :  { %882 = vmatpush1.bf16.msra.mxu0 %v1440_v58 }
  0xb7   :  { %401 = vmatpush1.bf16.msra.mxu1 %v1396_v47  ;;  %883 = vmatprep.subr.bf16.mxu0 %v1441_v59 }
  0xb8   :  { %402 = vmatprep.subr.bf16.mxu1 %v1401_v48  ;;  %v1467_v48 = vld [vmem:[#allocation12 + $0x144] ss:$8 sps:$4 sm:$0xff]  }
  0xba   :  { %884 = vmatpush1.bf16.msra.mxu0 %v1443_v60  ;;  %v454_v60 = vld [vmem:[#allocation8 + $0x18] sm:$0xff] }
  0xbb   :  { %403 = vmatpush1.bf16.msra.mxu1 %v1399_v51  ;;  %885 = vmatprep.subr.bf16.mxu0 %v1444_v61  ;;  %v1465_v51 = vld [vmem:[#allocation12 + $0x140] ss:$8 sps:$4 sm:$0xff]   ;;  %v1474_v61 = vld [vmem:[#allocation12 + $0x170] ss:$8 sps:$4 sm:$0xff]  }
  0xbc   :  { %404 = vmatprep.subr.bf16.mxu1 %v1404_v52  ;;  %v1470_v52 = vld [vmem:[#allocation12 + $0x154] ss:$8 sps:$4 sm:$0xff]  }
  0xbe   :  { %886 = vmatpush1.bf16.msra.mxu0 %v1446_v62  ;;  %v180_v62 = vrot.slane %v1903_v11, %v179_v56  ;;  %v1488_v11 = vld [vmem:[#allocation12 + $0x1b4] ss:$8 sps:$4 sm:$0xff]  }
  0xbf   :  { %405 = vmatpush1.bf16.msra.mxu1 %v1402_v54  ;;  %887 = vmatprep.subr.bf16.mxu0 %v1447_v63  ;;  %v1473_v54 = vld [vmem:[#allocation12 + $0x164] ss:$8 sps:$4 sm:$0xff]  }
  0xc0   :  { %1314 = vmatprep.subr.bf16.mxu1 %v1501_v4 }
  0xc2   :  { %423 = vmatmul.mubr.bf16.vlgmr.msra.gmra.mrb[4].mxu1 %v1891_v25  ;;  %888 = vmatpush1.bf16.msra.mxu0 %v1449_v0  ;;  %v1479_v0 = vld [vmem:[#allocation12 + $0x184] ss:$8 sps:$4 sm:$0xff]  }
  0xc3   :  { %889 = vmatprep.subr.bf16.mxu0 %v1450_v1  ;;  %1315 = vmatpush3.bf16.msra.mxu1 %v1502_v5  ;;  %v1482_v5 = vld [vmem:[#allocation12 + $0x194] ss:$8 sps:$4 sm:$0xff]  }
  0xc4   :  { %1316 = vmatprep.subr.bf16.mxu1 %v1503_v6  ;;  %v1480_v6 = vld [vmem:[#allocation12 + $0x190] ss:$8 sps:$4 sm:$0xff]  }
  0xc6   :  { %890 = vmatpush1.bf16.msra.mxu0 %v1452_v2  ;;  %v1477_v2 = vld [vmem:[#allocation12 + $0x180] ss:$8 sps:$4 sm:$0xff]  }
  0xc7   :  { %900 = vmatprep.subr.bf16.mxu0 %v1455_v3  ;;  %1317 = vmatpush3.bf16.msra.mxu1 %v1504_v7 }
 0x175   :  { %v383_v15 = vpop.f32.mrb[0].mxu1 }
 0x176   :  { %v384_v16 = vadd.f32 %v383_v15, %v172_v13  ;;  %v385_v17 = vpop.f32.mrb[1].mxu1  ;;  %v1486_v13 = vld [vmem:[#allocation12 + $0x1b0] ss:$8 sps:$4 sm:$0xff]   ;;  %v1489_v15 = vld [vmem:[#allocation12 + $0x1c0] ss:$8 sps:$4 sm:$0xff]  }
 0x177   :  { %v386_v18 = vadd.f32 %v385_v17, %v176_v14  ;;  %v387_v19 = vpop.f32.mrb[2].mxu1  ;;  %v1491_v14 = vld [vmem:[#allocation12 + $0x1c4] ss:$8 sps:$4 sm:$0xff]  }
 0x178   :  { %v435_v20 = vmul.f32 1.442695, %v384_v16  ;;  %v388_v21 = vpop.f32.mrb[3].mxu1  ;;  %vm431_vm0 = vcmp.gt.f32.partialorder %v384_v16, 0.0  ;;  %v1497_v19 = vld [vmem:[#allocation12 + $0x1e4] ss:$8 sps:$4 sm:$0xff]  }
 0x179   :  { %v437_v22 = vmul.f32 1.442695, %v386_v18  ;;  %vm432_vm1 = vcmp.gt.f32.partialorder %v386_v18, 0.0  ;;  %v1495_v21 = vld [vmem:[#allocation12 + $0x1e0] ss:$8 sps:$4 sm:$0xff]  }
 0x17a   :  { %1517 = vpow2.f32 %v435_v20 }
 0x17b   :  { %1519 = vpow2.f32 %v437_v22  ;;  %v1500_v22 = vld [vmem:[#allocation12 + $0x1f4] ss:$8 sps:$4 sm:$0xff]  }
 0x184   :  { %v1518_v23 = vpop.eup %1517 }
 0x185   :  { %v1520_v24 = vpop.eup %1519  ;;  %v1226_v25 = vadd.f32 -1.0, %v1518_v23 }
 0x186   :  { %v1227_v27 = vadd.f32 -1.0, %v1520_v24  ;;  %v453_v24 = vld [vmem:[#allocation8 + $0x10] sm:$0xff] }
 0x187   :  { %v447_v29 = vsel %vm431_vm0, %v384_v16, %v1226_v25  ;;  %v1494_v16 = vld [vmem:[#allocation12 + $0x1d4] ss:$8 sps:$4 sm:$0xff]   ;;  %v1498_v25 = vld [vmem:[#allocation12 + $0x1f0] ss:$8 sps:$4 sm:$0xff]  }
 0x188   :  { %v448_v30 = vsel %vm432_vm1, %v386_v18, %v1227_v27  ;;  %v455_v31 = vmul.f32 %v451_v26, %v447_v29  ;;  %v1492_v18 = vld [vmem:[#allocation12 + $0x1d0] ss:$8 sps:$4 sm:$0xff]  }
 0x189   :  { %v456_v32 = vmul.f32 %v452_v28, %v448_v30  ;;  %v1505_v28 = vld [vmem:[#allocation14 + $0x50] sm:$0xff]   ;;  %v1507_v30 = vld [vmem:[#allocation14 + $0x58] sm:$0xff]  }
 0x18a   :  { %v459_v35 = vpack.c.bf16 %v455_v31, %v455_v31  ;;  %v1506_v29 = vld [vmem:[#allocation14 + $0x10] sm:$0xff]   ;;  %1318 = vmatprep.subr.bf16.mxu1 %v1505_v28  ;;  %v1508_v31 = vld [vmem:[#allocation14 + $0x18] sm:$0xff]  }
 0x18b   :  { %v460_v33 = vpack.c.bf16 %v456_v32, %v456_v32  ;;  %1319 = vmatpush3.bf16.msra.mxu1 %v1506_v29  ;;  %v1509_v32 = vld [vmem:[#allocation14 + $0x60] sm:$0xff]  }
 0x18c   :  { %1320 = vmatprep.subr.bf16.mxu1 %v1507_v30 }
 0x18d   :  { %891 = vmatprep.mubr.bf16.mxu0 %v460_v33  ;;  %v1510_v33 = vld [vmem:[#allocation14 + $0x20] sm:$0xff]  }
 0x18e   :  { %892 = vmatmul.mubr.bf16.vlgmr.msra.gmra.mrb[0].mxu0 %v459_v35  ;;  %v1512_v35 = vld [vmem:[#allocation14 + $0x28] sm:$0xff]  }
 0x18f   :  { %901 = vmatpush1.bf16.msra.mxu0 %v1453_v34  ;;  %1321 = vmatpush3.bf16.msra.mxu1 %v1508_v31  ;;  %v1511_v34 = vld [vmem:[#allocation14 + $0x68] sm:$0xff]  }
 0x190   :  { %902 = vmatprep.subr.bf16.mxu0 %v1458_v36  ;;  %1322 = vmatprep.subr.bf16.mxu1 %v1509_v32  ;;  %v1513_v36 = vld [vmem:[#allocation14 + $0x70] sm:$0xff]  }
 0x193   :  { %903 = vmatpush1.bf16.msra.mxu0 %v1456_v37  ;;  %1323 = vmatpush3.bf16.msra.mxu1 %v1510_v33  ;;  %v1514_v37 = vld [vmem:[#allocation14 + $0x30] sm:$0xff]  }
 0x194   :  { %904 = vmatprep.subr.bf16.mxu0 %v1461_v39  ;;  %1324 = vmatprep.subr.bf16.mxu1 %v1511_v34  ;;  %v1516_v39 = vld [vmem:[#allocation14 + $0x38] sm:$0xff]  }
 0x195   :  { %v424_v43 = vpop.f32.mrb[4].mxu1 }
 0x196   :  { %v426_v44 = vpop.f32.mrb[5].mxu1  ;;  %v425_v4 = vadd.f32 %v424_v43, %v180_v62 }
 0x197   :  { %905 = vmatpush1.bf16.msra.mxu0 %v1459_v40  ;;  %v427_v46 = vadd.f32 %v426_v44, %v184_v41  ;;  %v428_v47 = vpop.f32.mrb[6].mxu1  ;;  %1325 = vmatpush3.bf16.msra.mxu1 %v1512_v35  ;;  %v527_v40 = vld [vmem:[%s1951_s7] sm:$0x3] }
 0x198   :  { %906 = vmatprep.subr.bf16.mxu0 %v1464_v42  ;;  %v429_v49 = vpop.f32.mrb[7].mxu1  ;;  %v439_v7 = vmul.f32 1.442695, %v425_v4  ;;  %vm433_vm3 = vcmp.gt.f32.partialorder %v425_v4, 0.0  ;;  %1326 = vmatprep.subr.bf16.mxu1 %v1513_v36  ;;  %v532_v41 = vrot.slane %v527_v40, %v1898_v10  ;;  %v536_v42 = vrot.slane %v527_v40, %v1906_v12 }
 0x199   :  { %v441_v50 = vmul.f32 1.442695, %v427_v46  ;;  %vm434_vm2 = vcmp.gt.f32.partialorder %v427_v46, 0.0 }
 0x19b   :  { %907 = vmatpush1.bf16.msra.mxu0 %v1462_v45  ;;  %1521 = vpow2.f32 %v441_v50  ;;  %1327 = vmatpush3.bf16.msra.mxu1 %v1514_v37 }
 0x19c   :  { %908 = vmatprep.subr.bf16.mxu0 %v1467_v48  ;;  %1523 = vpow2.f32 %v439_v7  ;;  %1328 = vmatprep.subr.bf16.mxu1 %v1515_v38 }
 0x19f   :  { %909 = vmatpush1.bf16.msra.mxu0 %v1465_v51  ;;  %1329 = vmatpush3.bf16.msra.mxu1 %v1516_v39  ;;  %v1145_v51 = vld [vmem:[%s1954_s10] sm:$0x3] }
 0x1a0   :  { %910 = vmatprep.subr.bf16.mxu0 %v1470_v52 }
 0x1a3   :  { %911 = vmatpush1.bf16.msra.mxu0 %v1468_v53 }
 0x1a4   :  { %912 = vmatprep.subr.bf16.mxu0 %v1473_v54 }
 0x1a5   :  { %v1522_v58 = vpop.eup %1521 }
 0x1a6   :  { %v1229_v59 = vadd.f32 -1.0, %v1522_v58  ;;  %v1524_v17 = vpop.eup %1523  ;;  %v1150_v58 = vrot.slane %v1145_v51, %v1898_v10 }
 0x1a7   :  { %913 = vmatpush1.bf16.msra.mxu0 %v1471_v55  ;;  %v1228_v20 = vadd.f32 -1.0, %v1524_v17  ;;  %v951_v55 = vld [vmem:[#allocation9] sm:$0xff] }
 0x1a8   :  { %v450_v63 = vsel %vm434_vm2, %v427_v46, %v1229_v59  ;;  %914 = vmatprep.subr.bf16.mxu0 %v1476_v57  ;;  %v952_v57 = vld [vmem:[#allocation9 + $0x8] sm:$0xff] }
 0x1a9   :  { %v458_v1 = vmul.f32 %v454_v60, %v450_v63  ;;  %v449_v23 = vsel %vm433_vm3, %v425_v4, %v1228_v20  ;;  %v1154_v60 = vrot.slane %v1145_v51, %v1906_v12  ;;  %v1132_v12 = vld [vmem:[#allocation6] sm:$0xff] }
 0x1aa   :  { %v457_v26 = vmul.f32 %v453_v24, %v449_v23  ;;  %vm1133_vm7 = vcmp.ne.s32.totalorder %v1132_v12, 0 }
 0x1ab   :  { %915 = vmatpush1.bf16.msra.mxu0 %v1474_v61  ;;  %v462_v3 = vpack.c.bf16 %v458_v1, %v458_v1 }
 0x1ac   :  { %916 = vmatprep.subr.bf16.mxu0 %v1479_v0  ;;  %v461_v27 = vpack.c.bf16 %v457_v26, %v457_v26 }
 0x1ad   :  { %932 = vmatprep.mubr.bf16.mxu0 %v462_v3 }
 0x1af   :  { %917 = vmatpush1.bf16.msra.mxu0 %v1477_v2 }
 0x1b0   :  { %918 = vmatprep.subr.bf16.mxu0 %v1482_v5  ;;  %v1313_v5 = vld [vmem:[#allocation2] ss:$0 sm:$0xff] }
 0x1b3   :  { %919 = vmatpush1.bf16.msra.mxu0 %v1480_v6 }
 0x1b4   :  { %920 = vmatprep.subr.bf16.mxu0 %v1485_v8 }
 0x1b7   :  { %921 = vmatpush1.bf16.msra.mxu0 %v1483_v9  ;;  %v1296_v9 = vld [vmem:[%s1953_s9] ss:$0 sm:$0xff] }
 0x1b8   :  { %922 = vmatprep.subr.bf16.mxu0 %v1488_v11 }
 0x1bb   :  { %923 = vmatpush1.bf16.msra.mxu0 %v1486_v13 }
 0x1bc   :  { %924 = vmatprep.subr.bf16.mxu0 %v1491_v14 }
 0x1bf   :  { %925 = vmatpush1.bf16.msra.mxu0 %v1489_v15 }
 0x1c0   :  { %926 = vmatprep.subr.bf16.mxu0 %v1494_v16 }
 0x1c3   :  { %927 = vmatpush1.bf16.msra.mxu0 %v1492_v18 }
 0x1c4   :  { %928 = vmatprep.subr.bf16.mxu0 %v1497_v19 }
 0x1c7   :  { %929 = vmatpush1.bf16.msra.mxu0 %v1495_v21 }
 0x1c8   :  { %930 = vmatprep.subr.bf16.mxu0 %v1500_v22 }
 0x1cb   :  { %931 = vmatpush1.bf16.msra.mxu0 %v1498_v25 }
 0x1ce   :  { %933 = vmatmul.mubr.bf16.vlgmr.msra.gmra.mrb[0].mxu0 %v461_v27 }
 0x2a1   :  { %v934_v43 = vpop.f32.mrb[0].mxu0 }
 0x2a2   :  { %v1336_v44 = vadd.f32 %v934_v43, %v532_v41  ;;  %v936_v45 = vpop.f32.mrb[1].mxu0 }
 0x2a3   :  { %v1337_v46 = vadd.f32 %v936_v45, %v536_v42  ;;  %v938_v47 = vpop.f32.mrb[2].mxu0 }
 0x2a4   :  { %v943_v48 = vmul.f32 1.442695, %v1336_v44  ;;  %v939_v49 = vpop.f32.mrb[3].mxu0  ;;  %vm941_vm4 = vcmp.gt.f32.partialorder %v1336_v44, 0.0 }
 0x2a5   :  { %v945_v50 = vmul.f32 1.442695, %v1337_v46  ;;  %vm942_vm5 = vcmp.gt.f32.partialorder %v1337_v46, 0.0 }
 0x2a6   :  { %1525 = vpow2.f32 %v943_v48 }
 0x2a7   :  { %1527 = vpow2.f32 %v945_v50 }
 0x2b0   :  { %v1526_v52 = vpop.eup %1525 }
 0x2b1   :  { %v1528_v53 = vpop.eup %1527  ;;  %v1294_v54 = vadd.f32 -1.0, %v1526_v52 }
 0x2b2   :  { %v1295_v56 = vadd.f32 -1.0, %v1528_v53 }
 0x2b3   :  { %v949_v59 = vsel %vm941_vm4, %v1336_v44, %v1294_v54 }
 0x2b4   :  { %v953_v61 = vmul.f32 %v951_v55, %v949_v59  ;;  %v950_v62 = vsel %vm942_vm5, %v1337_v46, %v1295_v56 }
 0x2b5   :  { %v954_v63 = vmul.f32 %v952_v57, %v950_v62 }
 0x2b6   :  { %v1157_v0 = vmul.f32 %v1150_v58, %v953_v61  ;;  %v955_v3 = vpack.c.bf16 %v953_v61, %v953_v61 }
 0x2b7   :  { %v956_v1 = vpack.c.bf16 %v954_v63, %v954_v63  ;;  %v1158_v2 = vmul.f32 %v1154_v60, %v954_v63 }
 0x2b9   :  { %1124 = vmatprep.mubr.bf16.mxu1 %v956_v1  ;;  %v1159_v4 = vadd.f32 %v1158_v2, %v1157_v0 }
 0x2ba   :  { %1125 = vmatmul.mubr.bf16.vlgmr.msra.gmra.mrb[8].mxu1 %v955_v3 }
 0x2bb   :  { %1160 = vadd.xlane.f32.xlu1 %v1159_v4 }
 0x348   :  { %v1161_v6 = vpop.xlane.xlu1 %1160 }
 0x349   :  { %v1169_v7 = vadd.f32 %v1313_v5, %v1161_v6 }
 0x34b   :  { %1171 = vst.msk [vmem:[%s1957_s13] sm:$0xff] %vm1170_vm6, %v1169_v7  ;;  %s1733_s13 = smov [#allocation15]  }
 0x34c   :  { %s1178_s2 = sshll.u32 %s1733_s13, 4  ;;  %s1179_s2 = int_to_ptr.vmem [resolvable:$true] %s1178_s2 }
 0x34d   :  { %s1687_s9 = scalar_lea.vmem %s1179_s2, 128  ;;  %p1692_p1 = scmp.lt.s32.totalorder %s1179_s2, %s1179_s2 }
 0x34e   :  { %p1688_p0 = scmp.ne.s32.totalorder %s1179_s2, %s1687_s9  ;;  %p1693_p2 = scmp.lt.s32.totalorder %s1687_s9, %s1687_s9 }
 0x350   :  { %p1694_p3 = por %p1693_p2, %p1692_p1 }
 0x352   :  { %p1695_p4 = pnand %p1694_p3, %p1688_p0 }
 0x38d   :  { %v1330_v10 = vpop.f32.mrb[8].mxu1 }
 0x38e   :  { %v1331_v8 = vpop.f32.mrb[9].mxu1 }
 0x38f   :  { %v1332_v11 = vadd.f32 %v1331_v8, %v1330_v10  ;;  %v1333_v13 = vpop.f32.mrb[10].mxu1 }
 0x390   :  { %v1334_v14 = vpop.f32.mrb[11].mxu1 }
 0x391   :  { %v1127_v15 = vadd.f32 %v1332_v11, %v1296_v9 }
 0x393   :  { %v1134_v16 = vsel %vm1133_vm7, %v1127_v15, -1e+30 }
 0x394   :  { %1135 = vmax.xlane.f32.xlu0 %v1134_v16 }
 0x421   :  { %v1136_v17 = vpop.xlane.xlu0 %1135 }
 0x422   :  { %v1137_v18 = vsub.f32 %v1134_v16, %v1136_v17 }
 0x424   :  { %v1138_v19 = vmul.f32 1.442695, %v1137_v18 }
 0x426   :  { %1529 = vpow2.f32 %v1138_v19 }
 0x430   :  { %v1530_v20 = vpop.eup %1529 }
 0x431   :  { %1140 = vadd.xlane.f32.xlu0 %v1530_v20 }
 0x4be   :  { %v1141_v21 = vpop.xlane.xlu0 %1140 }
 0x4bf   :  { %1531 = vrcp.f32 %v1141_v21 }
 0x4c9   :  { %v1532_v22 = vpop.eup %1531 }
 0x4ca   :  { %v1143_v23 = vmul.f32 %v1532_v22, %v1530_v20 }
 0x4cc   :  { %1144 = vst [vmem:[#allocation15] sm:$0xff] %v1143_v23 }
 0x4cd   :  { %1698 = shalt.err (!%p1695_p4)
}
 0x4ce   :  { %s1699_s22 = scalar_lea.hbm %s1956_s12, 128 }
 0x4cf   :  { %p1700_p5 = scmp.ne.s32.totalorder %s1956_s12, %s1699_s22  ;;  %p1703_p6 = scmp.lt.u32.totalorder %s1699_s22, %s1956_s12 }
 0x4d1   :  { %p1705_p7 = pnand %p1703_p6, %p1700_p5 }
 0x4d3   :  { %1708 = shalt.err (!%p1705_p7)
}
 0x4d4   :  { %1181 = dma.vmem_to_hbm [thread:$0]  %s1179_s2, 128, %s1956_s12, [#allocation5]  }
 0x4d5   :  { %1717 = dma.done.wait [#allocation5], 128  }
 0x4d6   :  { %1718 = vsyncadd [#allocation5], 4294967168 }
 0x4d7   :  { %1189 = vsyncpa [#allocation4], 1 }
 0x4d8   :  { %1190 = vsyncpa [#allocation7], 1 }
 0x4d9   :  { %1191 = vsyncpa [#allocation10], 1 }
 0x4da   :  { %1192 = vsyncpa [#allocation13], 1 }
 0x4db   :  { %1193 = vsyncpa [#allocation5], 1 }

</bundles_post_ra>
